<compile_context>
chip_gen: v5e
topology: v5e:2x2
jax: 0.10.0
libtpu: 0.0.40
codegen_flags: <defaults>
</compile_context>

<pallas_src>
import jax
import jax.numpy as jnp
from jax.experimental import pallas as pl
from jax.experimental.pallas import tpu as pltpu


def _round_up(v, m):
    return ((v + m - 1) // m) * m


def supcon_kernel(x_ref, we_ref, be_ref, w1_ref, b1_ref, w2_ref, b2_ref, out_ref):
    """One batch tile of the fused forward pass.

    x_ref : (TB, C*HW)   f32    flattened input tile (streamed per grid step)
    we_ref: (C*HW, Dp)   bf16   encoder weight with the 1/HW pooling folded in
    be_ref: (1, Dp)      f32    encoder bias (zero-padded to Dp)
    w1_ref: (Dp, Dp)     bf16   head linear 1 weight (zero-padded)
    b1_ref: (1, Dp)      f32    head linear 1 bias
    w2_ref: (Dp, F)      bf16   head linear 2 weight (zero-padded rows)
    b2_ref: (1, F)       f32    head linear 2 bias
    out_ref:(TB, F)      f32    L2-normalized features
    """
    # Cast the streamed f32 tile to bf16 on the VPU (cheaper than a separate
    # wrapper-side cast that costs an extra HBM read+write of x).
    x = x_ref[...].astype(jnp.bfloat16)

    # --- synthetic encoder: (global-average-pool folded into weight) + ReLU ---
    enc = jnp.dot(x, we_ref[...], preferred_element_type=jnp.float32)
    enc = jnp.maximum(enc + be_ref[...], 0.0)                        # (TB, Dp) f32

    # --- projection head: Linear -> ReLU -> Linear (bf16 in, f32 accumulate) ---
    h = jnp.dot(enc.astype(jnp.bfloat16), w1_ref[...],
                preferred_element_type=jnp.float32)
    h = jnp.maximum(h + b1_ref[...], 0.0)                            # (TB, Dp)
    z = jnp.dot(h.astype(jnp.bfloat16), w2_ref[...],
                preferred_element_type=jnp.float32)
    z = z + b2_ref[...]                                              # (TB, F)

    # --- F.normalize(z, dim=1) == z * rsqrt(max(sum(z^2), eps^2)), eps=1e-12 ---
    sumsq = jnp.sum(z * z, axis=1, keepdims=True)
    out_ref[...] = z * jax.lax.rsqrt(jnp.maximum(sumsq, 1e-24))


def init_params(key, c_in, dim_in, feat_dim):
    """Deterministic PyTorch-style uniform(-1/sqrt(fan_in), 1/sqrt(fan_in)) init."""
    ks = jax.random.split(key, 6)

    def lin(kw, kb, fan_in, fan_out):
        bound = 1.0 / jnp.sqrt(fan_in)
        w = jax.random.uniform(kw, (fan_in, fan_out), jnp.float32, -bound, bound)
        b = jax.random.uniform(kb, (1, fan_out), jnp.float32, -bound, bound)
        return w, b

    we, be = lin(ks[0], ks[1], c_in, dim_in)       # encoder linear
    w1, b1 = lin(ks[2], ks[3], dim_in, dim_in)     # head linear 1
    w2, b2 = lin(ks[4], ks[5], dim_in, feat_dim)   # head linear 2
    return we, be, w1, b1, w2, b2


def prepare_params(params, H, W):
    """Pad dim_in to a multiple of 128, fold 1/(H*W) pooling into the encoder
    weight, and cast matmul weights to bf16 (biases stay f32)."""
    we, be, w1, b1, w2, b2 = params
    C, D = we.shape
    F = w2.shape[1]
    HW = H * W
    Dp = _round_up(D, 128)

    we_p = jnp.zeros((C, Dp), jnp.float32).at[:, :D].set(we)
    be_p = jnp.zeros((1, Dp), jnp.float32).at[:, :D].set(be)
    w1_p = jnp.zeros((Dp, Dp), jnp.float32).at[:D, :D].set(w1)
    b1_p = jnp.zeros((1, Dp), jnp.float32).at[:, :D].set(b1)
    w2_p = jnp.zeros((Dp, F), jnp.float32).at[:D, :].set(w2)

    # (C, Dp) -> (C*HW, Dp), scaled by 1/HW: pooling becomes part of the matmul.
    # TODO(synk): for large C*HW backbones keep the (C, Dp) weight un-expanded
    # and add a K ('arbitrary') grid axis over chw chunks accumulating into a
    # VMEM f32 scratch instead of expanding here.
    we_exp = jnp.broadcast_to(we_p[:, None, :] / HW, (C, HW, Dp)).reshape(C * HW, Dp)

    return (we_exp.astype(jnp.bfloat16), be_p,
            w1_p.astype(jnp.bfloat16), b1_p,
            w2_p.astype(jnp.bfloat16), b2)


def _vmem_budget_bytes():
    """~3/4 of physical VMEM: <=48 MiB on v7x (64 MiB), <=96 MiB on v5e/v6e."""
    try:
        cap = int(pltpu.get_tpu_info().vmem_capacity_bytes)
    except Exception:
        cap = 64 << 20   # assume the smallest generation (v7x) if unqueryable
    return min((cap * 3) // 4, 96 << 20)


def _choose_tb(B, max_tb=512):
    """Batch tile: big enough to fill the MXU and amortize DMA/per-step cost,
    small enough to keep >= 2 grid steps (v7x megacore) and to avoid computing
    all-padding rows when B is tiny."""
    tb = min(max_tb, _round_up(max(B, 1), 8))
    if B > 8:
        tb = min(tb, _round_up(pl.cdiv(B, 2), 8))
    return max(tb, 8)


def supcon_forward(x, kparams, max_tb=512):
    """x: (B, C, H, W) f32 NCHW. Returns (B, feat_dim) f32 unit-norm features."""
    we_exp, be, w1, b1, w2, b2 = kparams
    B, C, H, W = x.shape
    chw = C * H * W
    assert we_exp.shape[0] == chw, "params were prepared for a different H*W"
    dp = we_exp.shape[1]
    fd = w2.shape[1]

    weight_bytes = sum(int(a.size) * a.dtype.itemsize
                       for a in (we_exp, be, w1, b1, w2, b2))
    budget = _vmem_budget_bytes()

    def plan_bytes(tb_):
        # double-buffered x/out tiles + (conservatively double-buffered)
        # resident weights + f32 activation working set (enc/h/z).
        return (2 * (tb_ * chw * 4 + tb_ * fd * 4)
                + 2 * weight_bytes
                + 3 * tb_ * dp * 4)

    tb = _choose_tb(B, max_tb)
    while tb > 8 and plan_bytes(tb) > budget:
        tb = max(8, _round_up(tb // 2, 8))
    if plan_bytes(tb) > budget:
        raise ValueError(
            f"resident weights ({weight_bytes / 2**20:.1f} MiB) do not fit the "
            f"VMEM budget ({budget / 2**20:.1f} MiB); split the chw reduction")

    b_pad = _round_up(B, tb)
    x2 = x.reshape(B, chw)                 # metadata-only reshape, stays f32
    if b_pad != B:
        x2 = jnp.pad(x2, ((0, b_pad - B), (0, 0)))
    grid = (b_pad // tb,)

    vmem_limit = int(min(max(plan_bytes(tb) * 3 // 2 + (4 << 20), 16 << 20), budget))

    flops = int(2 * b_pad * (chw * dp + dp * dp + dp * fd) + 4 * b_pad * fd)
    bytes_accessed = int(x2.size * 4 + weight_bytes + b_pad * fd * 4)

    const = lambda i: (0, 0)

    def build_in_specs(single_buffer_weights):
        if single_buffer_weights:
            wspec = lambda a: pl.BlockSpec(a.shape, const,
                                           pipeline_mode=pl.Buffered(1))
        else:
            wspec = lambda a: pl.BlockSpec(a.shape, const)
        return [pl.BlockSpec((tb, chw), lambda i: (i, 0))] + [
            wspec(a) for a in (we_exp, be, w1, b1, w2, b2)]

    def run(single_buffer_weights):
        return pl.pallas_call(
            supcon_kernel,
            out_shape=jax.ShapeDtypeStruct((b_pad, fd), jnp.float32),
            grid=grid,
            in_specs=build_in_specs(single_buffer_weights),
            out_specs=pl.BlockSpec((tb, fd), lambda i: (i, 0)),
            compiler_params=pltpu.CompilerParams(
                dimension_semantics=("parallel",),
                vmem_limit_bytes=vmem_limit,
            ),
            cost_estimate=pl.CostEstimate(
                flops=flops, transcendentals=b_pad,
                bytes_accessed=bytes_accessed),
        )(x2, we_exp, be, w1, b1, w2, b2)

    try:
        # Weights/biases have constant index_maps: one VMEM buffer is enough
        # (halves their resident footprint; matters for real backbones / v7x).
        out = run(single_buffer_weights=True)
    except Exception:
        # pipeline_mode=pl.Buffered(1) unsupported on this jax/libtpu combo;
        # fall back to default double-buffering (correctness unaffected).
        out = run(single_buffer_weights=False)

    return out[:B]


def supcon_reference_f32(x, params):
    """Original module semantics, pure f32 JAX, unpadded params."""
    we, be, w1, b1, w2, b2 = params
    B, C, H, W = x.shape
    pooled = jnp.mean(x.reshape(B, C, H * W), axis=-1)
    enc = jnp.maximum(pooled @ we + be, 0.0)
    h = jnp.maximum(enc @ w1 + b1, 0.0)
    z = h @ w2 + b2
    norm = jnp.sqrt(jnp.sum(z * z, axis=1, keepdims=True))
    return z / jnp.maximum(norm, 1e-12)


def supcon_reference_matched(x, kparams):
    """Pure-JAX reference applying the exact bf16/f32 mix the kernel uses."""
    we_exp, be, w1, b1, w2, b2 = kparams
    B = x.shape[0]
    xf = x.reshape(B, -1).astype(jnp.bfloat16).astype(jnp.float32)
    enc = jnp.maximum(xf @ we_exp.astype(jnp.float32) + be, 0.0)
    h = jnp.maximum(enc.astype(jnp.bfloat16).astype(jnp.float32)
                    @ w1.astype(jnp.float32) + b1, 0.0)
    z = h.astype(jnp.bfloat16).astype(jnp.float32) @ w2.astype(jnp.float32) + b2
    sumsq = jnp.sum(z * z, axis=1, keepdims=True)
    return z * jax.lax.rsqrt(jnp.maximum(sumsq, 1e-24))


if __name__ == "__main__":
    B, C, H, W = 2, 4, 16, 16
    dim_in, feat_dim = 32, 128

    key = jax.random.PRNGKey(0)
    kx, kx2, kp = jax.random.split(key, 3)
    x = jax.random.normal(kx, (B, C, H, W), jnp.float32)
    params = init_params(kp, C, dim_in, feat_dim)
    kparams = prepare_params(params, H, W)

    feat = supcon_forward(x, kparams)
    feat = jax.block_until_ready(feat)
    assert feat.shape == (B, feat_dim)

    # Tight check vs a reference with matching bf16/f32 mixed precision.
    ref_m = supcon_reference_matched(x, kparams)
    assert jnp.allclose(feat, ref_m, atol=1e-4, rtol=1e-4), "mismatch vs matched reference"

    # bf16-level check vs exact f32 module semantics.
    ref_f = supcon_reference_f32(x, params)
    assert jnp.allclose(feat, ref_f, atol=3e-2, rtol=3e-2), "mismatch vs f32 reference"

    # Unit-norm sanity (F.normalize output).
    assert jnp.allclose(jnp.linalg.norm(feat, axis=1), 1.0, atol=1e-5)

    # Exercise the multi-tile / >=2-grid-step path (still small).
    xb = jax.random.normal(kx2, (48, C, H, W), jnp.float32)
    feat_b = jax.block_until_ready(supcon_forward(xb, kparams))
    ref_b = supcon_reference_matched(xb, kparams)
    assert feat_b.shape == (48, feat_dim)
    assert jnp.allclose(feat_b, ref_b, atol=1e-4, rtol=1e-4), "mismatch (batched)"
    assert jnp.allclose(jnp.linalg.norm(feat_b, axis=1), 1.0, atol=1e-5)

    print("KERNEL_OK")
</pallas_src>

<mosaic_0001>
module attributes {stable_mosaic.version = 11 : i64} {
  func.func @supcon_kernel(%arg0: i32, %arg1: memref<8x1024xf32, #tpu.memory_space<vmem>>, %arg2: memref<1024x128xbf16, #tpu.memory_space<vmem>>, %arg3: memref<1x128xf32, #tpu.memory_space<vmem>>, %arg4: memref<128x128xbf16, #tpu.memory_space<vmem>>, %arg5: memref<1x128xf32, #tpu.memory_space<vmem>>, %arg6: memref<128x128xbf16, #tpu.memory_space<vmem>>, %arg7: memref<1x128xf32, #tpu.memory_space<vmem>>, %arg8: memref<8x128xf32, #tpu.memory_space<vmem>>) attributes {dimension_semantics = [#tpu.dimension_semantics<parallel>], iteration_bounds = array<i64: 1>, scalar_prefetch = 0 : i64, scratch_operands = 0 : i64, tpu.core_type = #tpu.core_type<tc>, window_params = [{transform_indices = @transform_0, window_bounds = array<i64: 8, 1024>}, {pipeline_mode = #tpu.pipeline_mode<synchronous>, transform_indices = @transform_1, window_bounds = array<i64: 1024, 128>}, {pipeline_mode = #tpu.pipeline_mode<synchronous>, transform_indices = @transform_2, window_bounds = array<i64: 1, 128>}, {pipeline_mode = #tpu.pipeline_mode<synchronous>, transform_indices = @transform_3, window_bounds = array<i64: 128, 128>}, {pipeline_mode = #tpu.pipeline_mode<synchronous>, transform_indices = @transform_4, window_bounds = array<i64: 1, 128>}, {pipeline_mode = #tpu.pipeline_mode<synchronous>, transform_indices = @transform_5, window_bounds = array<i64: 128, 128>}, {pipeline_mode = #tpu.pipeline_mode<synchronous>, transform_indices = @transform_6, window_bounds = array<i64: 1, 128>}, {transform_indices = @transform_7, window_bounds = array<i64: 8, 128>}]} {
    %c0 = arith.constant 0 : index
    %c0_0 = arith.constant 0 : index
    %0 = vector.load %arg1[%c0, %c0_0] : memref<8x1024xf32, #tpu.memory_space<vmem>>, vector<8x1024xf32>
    %1 = arith.truncf %0 : vector<8x1024xf32> to vector<8x1024xbf16>
    %c0_1 = arith.constant 0 : index
    %c0_2 = arith.constant 0 : index
    %2 = vector.load %arg2[%c0_1, %c0_2] : memref<1024x128xbf16, #tpu.memory_space<vmem>>, vector<1024x128xbf16>
    %cst = arith.constant dense<0.000000e+00> : vector<8x128xf32>
    %3 = tpu.matmul %1, %2, %cst {dimension_numbers = #tpu.dot_dimension_numbers<[1], [0], [0], [1], [0, 0, 1, 1], [], []>} : vector<8x1024xbf16>, vector<1024x128xbf16>, vector<8x128xf32> -> vector<8x128xf32>
    %c0_3 = arith.constant 0 : index
    %c0_4 = arith.constant 0 : index
    %4 = vector.load %arg3[%c0_3, %c0_4] : memref<1x128xf32, #tpu.memory_space<vmem>>, vector<1x128xf32>
    %5 = vector.broadcast %4 : vector<1x128xf32> to vector<8x128xf32>
    %6 = arith.addf %3, %5 : vector<8x128xf32>
    %cst_5 = arith.constant 0.000000e+00 : f32
    %7 = vector.broadcast %cst_5 : f32 to vector<8x128xf32>
    %8 = arith.maximumf %6, %7 : vector<8x128xf32>
    %9 = arith.truncf %8 : vector<8x128xf32> to vector<8x128xbf16>
    %c0_6 = arith.constant 0 : index
    %c0_7 = arith.constant 0 : index
    %10 = vector.load %arg4[%c0_6, %c0_7] : memref<128x128xbf16, #tpu.memory_space<vmem>>, vector<128x128xbf16>
    %cst_8 = arith.constant dense<0.000000e+00> : vector<8x128xf32>
    %11 = tpu.matmul %9, %10, %cst_8 {dimension_numbers = #tpu.dot_dimension_numbers<[1], [0], [0], [1], [0, 0, 1, 1], [], []>} : vector<8x128xbf16>, vector<128x128xbf16>, vector<8x128xf32> -> vector<8x128xf32>
    %c0_9 = arith.constant 0 : index
    %c0_10 = arith.constant 0 : index
    %12 = vector.load %arg5[%c0_9, %c0_10] : memref<1x128xf32, #tpu.memory_space<vmem>>, vector<1x128xf32>
    %13 = vector.broadcast %12 : vector<1x128xf32> to vector<8x128xf32>
    %14 = arith.addf %11, %13 : vector<8x128xf32>
    %cst_11 = arith.constant 0.000000e+00 : f32
    %15 = vector.broadcast %cst_11 : f32 to vector<8x128xf32>
    %16 = arith.maximumf %14, %15 : vector<8x128xf32>
    %17 = arith.truncf %16 : vector<8x128xf32> to vector<8x128xbf16>
    %c0_12 = arith.constant 0 : index
    %c0_13 = arith.constant 0 : index
    %18 = vector.load %arg6[%c0_12, %c0_13] : memref<128x128xbf16, #tpu.memory_space<vmem>>, vector<128x128xbf16>
    %cst_14 = arith.constant dense<0.000000e+00> : vector<8x128xf32>
    %19 = tpu.matmul %17, %18, %cst_14 {dimension_numbers = #tpu.dot_dimension_numbers<[1], [0], [0], [1], [0, 0, 1, 1], [], []>} : vector<8x128xbf16>, vector<128x128xbf16>, vector<8x128xf32> -> vector<8x128xf32>
    %c0_15 = arith.constant 0 : index
    %c0_16 = arith.constant 0 : index
    %20 = vector.load %arg7[%c0_15, %c0_16] : memref<1x128xf32, #tpu.memory_space<vmem>>, vector<1x128xf32>
    %21 = vector.broadcast %20 : vector<1x128xf32> to vector<8x128xf32>
    %22 = arith.addf %19, %21 : vector<8x128xf32>
    %23 = arith.mulf %22, %22 : vector<8x128xf32>
    %cst_17 = arith.constant dense<0.000000e+00> : vector<8xf32>
    %24 = vector.multi_reduction <add>, %23, %cst_17 [1] : vector<8x128xf32> to vector<8xf32>
    %25 = vector.shape_cast %24 : vector<8xf32> to vector<8x1xf32>
    %cst_18 = arith.constant 1.000000e-24 : f32
    %26 = vector.broadcast %cst_18 : f32 to vector<8x1xf32>
    %27 = arith.maximumf %25, %26 : vector<8x1xf32>
    %28 = math.rsqrt %27 : vector<8x1xf32>
    %29 = vector.broadcast %28 : vector<8x1xf32> to vector<8x128xf32>
    %30 = arith.mulf %22, %29 : vector<8x128xf32>
    %c0_19 = arith.constant 0 : index
    %c0_20 = arith.constant 0 : index
    %31 = vector.load %arg8[%c0_19, %c0_20] : memref<8x128xf32, #tpu.memory_space<vmem>>, vector<8x128xf32>
    tpu.vector_store %arg8[%c0_19, %c0_20], %30 {strides = array<i32>} : memref<8x128xf32, #tpu.memory_space<vmem>>, vector<8x128xf32>,
    return
  }
  func.func @transform_0(%arg0: i32) -> (i32, i32) {
    %c0_i32 = arith.constant 0 : i32
    %c0_i32_0 = arith.constant 0 : i32
    return %arg0, %c0_i32 : i32, i32
  }
  func.func @transform_1(%arg0: i32) -> (i32, i32) {
    %c0_i32 = arith.constant 0 : i32
    %c0_i32_0 = arith.constant 0 : i32
    %c0_i32_1 = arith.constant 0 : i32
    return %c0_i32, %c0_i32_0 : i32, i32
  }
  func.func @transform_2(%arg0: i32) -> (i32, i32) {
    %c0_i32 = arith.constant 0 : i32
    %c0_i32_0 = arith.constant 0 : i32
    %c0_i32_1 = arith.constant 0 : i32
    return %c0_i32, %c0_i32_0 : i32, i32
  }
  func.func @transform_3(%arg0: i32) -> (i32, i32) {
    %c0_i32 = arith.constant 0 : i32
    %c0_i32_0 = arith.constant 0 : i32
    %c0_i32_1 = arith.constant 0 : i32
    return %c0_i32, %c0_i32_0 : i32, i32
  }
  func.func @transform_4(%arg0: i32) -> (i32, i32) {
    %c0_i32 = arith.constant 0 : i32
    %c0_i32_0 = arith.constant 0 : i32
    %c0_i32_1 = arith.constant 0 : i32
    return %c0_i32, %c0_i32_0 : i32, i32
  }
  func.func @transform_5(%arg0: i32) -> (i32, i32) {
    %c0_i32 = arith.constant 0 : i32
    %c0_i32_0 = arith.constant 0 : i32
    %c0_i32_1 = arith.constant 0 : i32
    return %c0_i32, %c0_i32_0 : i32, i32
  }
  func.func @transform_6(%arg0: i32) -> (i32, i32) {
    %c0_i32 = arith.constant 0 : i32
    %c0_i32_0 = arith.constant 0 : i32
    %c0_i32_1 = arith.constant 0 : i32
    return %c0_i32, %c0_i32_0 : i32, i32
  }
  func.func @transform_7(%arg0: i32) -> (i32, i32) {
    %c0_i32 = arith.constant 0 : i32
    %c0_i32_0 = arith.constant 0 : i32
    return %arg0, %c0_i32 : i32, i32
  }
}

module attributes {stable_mosaic.version = 11 : i64} {
  func.func @supcon_kernel(%arg0: i32, %arg1: memref<8x1024xf32, #tpu.memory_space<vmem>>, %arg2: memref<1024x128xbf16, #tpu.memory_space<vmem>>, %arg3: memref<1x128xf32, #tpu.memory_space<vmem>>, %arg4: memref<128x128xbf16, #tpu.memory_space<vmem>>, %arg5: memref<1x128xf32, #tpu.memory_space<vmem>>, %arg6: memref<128x128xbf16, #tpu.memory_space<vmem>>, %arg7: memref<1x128xf32, #tpu.memory_space<vmem>>, %arg8: memref<8x128xf32, #tpu.memory_space<vmem>>) attributes {dimension_semantics = [#tpu.dimension_semantics<parallel>], iteration_bounds = array<i64: 1>, scalar_prefetch = 0 : i64, scratch_operands = 0 : i64, tpu.core_type = #tpu.core_type<tc>, window_params = [{transform_indices = @transform_0, window_bounds = array<i64: 8, 1024>}, {pipeline_mode = #tpu.pipeline_mode<synchronous>, transform_indices = @transform_1, window_bounds = array<i64: 1024, 128>}, {pipeline_mode = #tpu.pipeline_mode<synchronous>, transform_indices = @transform_2, window_bounds = array<i64: 1, 128>}, {pipeline_mode = #tpu.pipeline_mode<synchronous>, transform_indices = @transform_3, window_bounds = array<i64: 128, 128>}, {pipeline_mode = #tpu.pipeline_mode<synchronous>, transform_indices = @transform_4, window_bounds = array<i64: 1, 128>}, {pipeline_mode = #tpu.pipeline_mode<synchronous>, transform_indices = @transform_5, window_bounds = array<i64: 128, 128>}, {pipeline_mode = #tpu.pipeline_mode<synchronous>, transform_indices = @transform_6, window_bounds = array<i64: 1, 128>}, {transform_indices = @transform_7, window_bounds = array<i64: 8, 128>}]} {
    %c0 = arith.constant 0 : index
    %c0_0 = arith.constant 0 : index
    %0 = vector.load %arg1[%c0, %c0_0] : memref<8x1024xf32, #tpu.memory_space<vmem>>, vector<8x1024xf32>
    %1 = arith.truncf %0 : vector<8x1024xf32> to vector<8x1024xbf16>
    %c0_1 = arith.constant 0 : index
    %c0_2 = arith.constant 0 : index
    %2 = vector.load %arg2[%c0_1, %c0_2] : memref<1024x128xbf16, #tpu.memory_space<vmem>>, vector<1024x128xbf16>
    %cst = arith.constant dense<0.000000e+00> : vector<8x128xf32>
    %3 = tpu.matmul %1, %2, %cst {dimension_numbers = #tpu.dot_dimension_numbers<[1], [0], [0], [1], [0, 0, 1, 1], [], []>} : vector<8x1024xbf16>, vector<1024x128xbf16>, vector<8x128xf32> -> vector<8x128xf32>
    %c0_3 = arith.constant 0 : index
    %c0_4 = arith.constant 0 : index
    %4 = vector.load %arg3[%c0_3, %c0_4] : memref<1x128xf32, #tpu.memory_space<vmem>>, vector<1x128xf32>
    %5 = vector.broadcast %4 : vector<1x128xf32> to vector<8x128xf32>
    %6 = arith.addf %3, %5 : vector<8x128xf32>
    %cst_5 = arith.constant 0.000000e+00 : f32
    %7 = vector.broadcast %cst_5 : f32 to vector<8x128xf32>
    %8 = arith.maximumf %6, %7 : vector<8x128xf32>
    %9 = arith.truncf %8 : vector<8x128xf32> to vector<8x128xbf16>
    %c0_6 = arith.constant 0 : index
    %c0_7 = arith.constant 0 : index
    %10 = vector.load %arg4[%c0_6, %c0_7] : memref<128x128xbf16, #tpu.memory_space<vmem>>, vector<128x128xbf16>
    %cst_8 = arith.constant dense<0.000000e+00> : vector<8x128xf32>
    %11 = tpu.matmul %9, %10, %cst_8 {dimension_numbers = #tpu.dot_dimension_numbers<[1], [0], [0], [1], [0, 0, 1, 1], [], []>} : vector<8x128xbf16>, vector<128x128xbf16>, vector<8x128xf32> -> vector<8x128xf32>
    %c0_9 = arith.constant 0 : index
    %c0_10 = arith.constant 0 : index
    %12 = vector.load %arg5[%c0_9, %c0_10] : memref<1x128xf32, #tpu.memory_space<vmem>>, vector<1x128xf32>
    %13 = vector.broadcast %12 : vector<1x128xf32> to vector<8x128xf32>
    %14 = arith.addf %11, %13 : vector<8x128xf32>
    %cst_11 = arith.constant 0.000000e+00 : f32
    %15 = vector.broadcast %cst_11 : f32 to vector<8x128xf32>
    %16 = arith.maximumf %14, %15 : vector<8x128xf32>
    %17 = arith.truncf %16 : vector<8x128xf32> to vector<8x128xbf16>
    %c0_12 = arith.constant 0 : index
    %c0_13 = arith.constant 0 : index
    %18 = vector.load %arg6[%c0_12, %c0_13] : memref<128x128xbf16, #tpu.memory_space<vmem>>, vector<128x128xbf16>
    %cst_14 = arith.constant dense<0.000000e+00> : vector<8x128xf32>
    %19 = tpu.matmul %17, %18, %cst_14 {dimension_numbers = #tpu.dot_dimension_numbers<[1], [0], [0], [1], [0, 0, 1, 1], [], []>} : vector<8x128xbf16>, vector<128x128xbf16>, vector<8x128xf32> -> vector<8x128xf32>
    %c0_15 = arith.constant 0 : index
    %c0_16 = arith.constant 0 : index
    %20 = vector.load %arg7[%c0_15, %c0_16] : memref<1x128xf32, #tpu.memory_space<vmem>>, vector<1x128xf32>
    %21 = vector.broadcast %20 : vector<1x128xf32> to vector<8x128xf32>
    %22 = arith.addf %19, %21 : vector<8x128xf32>
    %23 = arith.mulf %22, %22 : vector<8x128xf32>
    %cst_17 = arith.constant dense<0.000000e+00> : vector<8xf32>
    %24 = vector.multi_reduction <add>, %23, %cst_17 [1] : vector<8x128xf32> to vector<8xf32>
    %25 = vector.shape_cast %24 : vector<8xf32> to vector<8x1xf32>
    %cst_18 = arith.constant 1.000000e-24 : f32
    %26 = vector.broadcast %cst_18 : f32 to vector<8x1xf32>
    %27 = arith.maximumf %25, %26 : vector<8x1xf32>
    %28 = math.rsqrt %27 : vector<8x1xf32>
    %29 = vector.broadcast %28 : vector<8x1xf32> to vector<8x128xf32>
    %30 = arith.mulf %22, %29 : vector<8x128xf32>
    %c0_19 = arith.constant 0 : index
    %c0_20 = arith.constant 0 : index
    %31 = vector.load %arg8[%c0_19, %c0_20] : memref<8x128xf32, #tpu.memory_space<vmem>>, vector<8x128xf32>
    tpu.vector_store %arg8[%c0_19, %c0_20], %30 {strides = array<i32>} : memref<8x128xf32, #tpu.memory_space<vmem>>, vector<8x128xf32>,
    return
  }
  func.func @transform_0(%arg0: i32) -> (i32, i32) {
    %c0_i32 = arith.constant 0 : i32
    %c0_i32_0 = arith.constant 0 : i32
    return %arg0, %c0_i32 : i32, i32
  }
  func.func @transform_1(%arg0: i32) -> (i32, i32) {
    %c0_i32 = arith.constant 0 : i32
    %c0_i32_0 = arith.constant 0 : i32
    %c0_i32_1 = arith.constant 0 : i32
    return %c0_i32, %c0_i32_0 : i32, i32
  }
  func.func @transform_2(%arg0: i32) -> (i32, i32) {
    %c0_i32 = arith.constant 0 : i32
    %c0_i32_0 = arith.constant 0 : i32
    %c0_i32_1 = arith.constant 0 : i32
    return %c0_i32, %c0_i32_0 : i32, i32
  }
  func.func @transform_3(%arg0: i32) -> (i32, i32) {
    %c0_i32 = arith.constant 0 : i32
    %c0_i32_0 = arith.constant 0 : i32
    %c0_i32_1 = arith.constant 0 : i32
    return %c0_i32, %c0_i32_0 : i32, i32
  }
  func.func @transform_4(%arg0: i32) -> (i32, i32) {
    %c0_i32 = arith.constant 0 : i32
    %c0_i32_0 = arith.constant 0 : i32
    %c0_i32_1 = arith.constant 0 : i32
    return %c0_i32, %c0_i32_0 : i32, i32
  }
  func.func @transform_5(%arg0: i32) -> (i32, i32) {
    %c0_i32 = arith.constant 0 : i32
    %c0_i32_0 = arith.constant 0 : i32
    %c0_i32_1 = arith.constant 0 : i32
    return %c0_i32, %c0_i32_0 : i32, i32
  }
  func.func @transform_6(%arg0: i32) -> (i32, i32) {
    %c0_i32 = arith.constant 0 : i32
    %c0_i32_0 = arith.constant 0 : i32
    %c0_i32_1 = arith.constant 0 : i32
    return %c0_i32, %c0_i32_0 : i32, i32
  }
  func.func @transform_7(%arg0: i32) -> (i32, i32) {
    %c0_i32 = arith.constant 0 : i32
    %c0_i32_0 = arith.constant 0 : i32
    return %arg0, %c0_i32 : i32, i32
  }
}

</mosaic_0001>

<bundles_post_ra>
// kernel: tpu_custom_call.1
= control target key start
LH: loop header
LB: loop body
LE: loop exit
PB: predicated region body
PF: predicated region fallthrough
CT: control target
= control target key end

     0   :  { %12 = vsyncpa [#allocation3], 0  ;;  %s1536_s0 = inlined_call_operand.hbm [shape: f32[8,1024], index: 0, kind: input, shape index: {}]   ;;  %s1537_s1 = inlined_call_operand.hbm [shape: bf16[1024,128], index: 1, kind: input, shape index: {}]   ;;  %s1538_s2 = inlined_call_operand.vmem [shape: f32[1,128], index: 2, kind: input, shape index: {}]   ;;  %s1539_s3 = inlined_call_operand.hbm [shape: bf16[128,128], index: 3, kind: input, shape index: {}]   ;;  %s1540_s4 = inlined_call_operand.vmem [shape: f32[1,128], index: 4, kind: input, shape index: {}]   ;;  %s1541_s5 = inlined_call_operand.hbm [shape: bf16[128,128], index: 5, kind: input, shape index: {}]   ;;  %s1542_s6 = inlined_call_operand.vmem [shape: f32[1,128], index: 6, kind: input, shape index: {}]   ;;  %s1543_s7 = inlined_call_operand.hbm [shape: f32[8,128], index: 7, kind: output, shape index: {}]  }
   0x1   :  { %13 = vsyncpa [#allocation6], 0 }
   0x2   :  { %14 = vsyncpa [#allocation9], 0  ;;  %s31_s26 = sshll.u32 %s1537_s1, 4  ;;  %s32_s26 = int_to_ptr.hbm [resolvable:$true] %s31_s26 }
   0x3   :  { %15 = vsyncpa [#allocation4], 0  ;;  %s1465_s27 = smov [#allocation5]   ;;  %s21_s8 = sshll.u32 %s1536_s0, 4  ;;  %s22_s8 = int_to_ptr.hbm [resolvable:$true] %s21_s8 }
   0x4   :  { %s33_s28 = sshll.u32 %s1465_s27, 4  ;;  %s1466_s9 = smov 64   ;;  %s34_s28 = int_to_ptr.vmem [resolvable:$true] %s33_s28 }
   0x5   :  { %s1467_s10 = smov 4   ;;  %s1468_s11 = smov [#allocation2]  }
   0x6   :  { %39 = dma.hbm_to_vmem [thread:$0]  %s32_s26, 8192, %s34_s28, [#allocation6], %s1466_s9, %s1466_s9, %s1467_s10  }
   0x7   :  { %s23_s12 = sshll.u32 %s1468_s11, 4  ;;  %s46_s15 = sshll.u32 %s1539_s3, 4  ;;  %s24_s12 = int_to_ptr.vmem [resolvable:$true] %s23_s12  ;;  %s47_s15 = int_to_ptr.hbm [resolvable:$true] %s46_s15 }
   0x8   :  { %26 = dma.hbm_to_vmem [thread:$0]  %s22_s8, 1024, %s24_s12, [#allocation3]  }
   0x9   :  { %s61_s17 = sshll.u32 %s1541_s5, 4  ;;  %s1469_s18 = smov [#allocation7]   ;;  %s62_s17 = int_to_ptr.hbm [resolvable:$true] %s61_s17 }
   0xa   :  { %s48_s19 = sshll.u32 %s1469_s18, 4  ;;  %s1470_s0 = smov [#allocation8]   ;;  %s49_s19 = int_to_ptr.vmem [resolvable:$true] %s48_s19 }
   0xb   :  { %54 = dma.hbm_to_vmem [thread:$0]  %s47_s15, 1024, %s49_s19, [#allocation6], %s1466_s9, %s1466_s9, %s1467_s10  }
   0xc   :  { %s63_s20 = sshll.u32 %s1470_s0, 4  ;;  %s64_s20 = int_to_ptr.vmem [resolvable:$true] %s63_s20 }
   0xd   :  { %69 = dma.hbm_to_vmem [thread:$0]  %s62_s17, 1024, %s64_s20, [#allocation9], %s1466_s9, %s1466_s9, %s1467_s10  }
   0xe   :  { %1457 = dma.done.wait [#allocation3], 1024  }
   0xf   :  { %1458 = vsyncadd [#allocation3], 4294966272 }
  0x10   :  { %1459 = dma.done.wait [#allocation6], 9216  }
  0x11   :  { %1460 = vsyncadd [#allocation6], 4294958080 }
  0x12   :  { %1461 = dma.done.wait [#allocation9], 1024  }
  0x13   :  { %1462 = vsyncadd [#allocation9], 4294966272  ;;  %v1252_v0 = vld [vmem:[#allocation5 + $0x38] sm:$0xff]  ;;  %v1251_v4 = vld [vmem:[#allocation5 + $0x30] sm:$0xff]  ;;  %s913_s26 = sshll.u32 %s1543_s7, 4  ;;  %s914_s26 = int_to_ptr.hbm [resolvable:$true] %s913_s26 }
  0x14   :  { %v1260_v1 = vld [vmem:[#allocation5 + $0x78] sm:$0xff]  ;;  %620 = vmatpush.bf16.msra.mxu0 %v1252_v0  ;;  %v1259_v5 = vld [vmem:[#allocation5 + $0x70] sm:$0xff]  ;;  %v1250_v8 = vld [vmem:[#allocation5 + $0x28] sm:$0xff] }
  0x15   :  { %v1268_v2 = vld [vmem:[#allocation5 + $0xb8] sm:$0xff]  ;;  %633 = vmatpush.bf16.msra.mxu1 %v1260_v1  ;;  %v1267_v6 = vld [vmem:[#allocation5 + $0xb0] sm:$0xff]  ;;  %v1258_v9 = vld [vmem:[#allocation5 + $0x68] sm:$0xff] }
  0x16   :  { %v1276_v3 = vld [vmem:[#allocation5 + $0xf8] sm:$0xff]  ;;  %646 = vmatpush.bf16.msra.mxu2 %v1268_v2  ;;  %v1275_v7 = vld [vmem:[#allocation5 + $0xf0] sm:$0xff]  ;;  %v1266_v10 = vld [vmem:[#allocation5 + $0xa8] sm:$0xff] }
  0x17   :  { %659 = vmatpush.bf16.msra.mxu3 %v1276_v3  ;;  %v1274_v11 = vld [vmem:[#allocation5 + $0xe8] sm:$0xff]  ;;  %v1249_v12 = vld [vmem:[#allocation5 + $0x20] sm:$0xff]  ;;  %v1248_v16 = vld [vmem:[#allocation5 + $0x18] sm:$0xff] }
  0x18   :  { %621 = vmatpush.bf16.msra.mxu0 %v1251_v4  ;;  %v1257_v13 = vld [vmem:[#allocation5 + $0x60] sm:$0xff]  ;;  %v1256_v17 = vld [vmem:[#allocation5 + $0x58] sm:$0xff]  ;;  %v1247_v20 = vld [vmem:[#allocation5 + $0x10] sm:$0xff] }
  0x19   :  { %634 = vmatpush.bf16.msra.mxu1 %v1259_v5  ;;  %v1265_v14 = vld [vmem:[#allocation5 + $0xa0] sm:$0xff]  ;;  %v1264_v18 = vld [vmem:[#allocation5 + $0x98] sm:$0xff]  ;;  %v1255_v21 = vld [vmem:[#allocation5 + $0x50] sm:$0xff] }
  0x1a   :  { %647 = vmatpush.bf16.msra.mxu2 %v1267_v6  ;;  %v1273_v15 = vld [vmem:[#allocation5 + $0xe0] sm:$0xff]  ;;  %v1272_v19 = vld [vmem:[#allocation5 + $0xd8] sm:$0xff]  ;;  %v1263_v22 = vld [vmem:[#allocation5 + $0x90] sm:$0xff] }
  0x1b   :  { %660 = vmatpush.bf16.msra.mxu3 %v1275_v7  ;;  %v1271_v23 = vld [vmem:[#allocation5 + $0xd0] sm:$0xff]  ;;  %v1246_v24 = vld [vmem:[#allocation5 + $0x8] sm:$0xff]  ;;  %v1245_v28 = vld [vmem:[#allocation5] sm:$0xff] }
  0x1c   :  { %622 = vmatpush.bf16.msra.mxu0 %v1250_v8  ;;  %v1254_v25 = vld [vmem:[#allocation5 + $0x48] sm:$0xff]  ;;  %v1253_v29 = vld [vmem:[#allocation5 + $0x40] sm:$0xff]  ;;  %v1284_v32 = vld [vmem:[#allocation5 + $0x138] sm:$0xff] }
  0x1d   :  { %635 = vmatpush.bf16.msra.mxu1 %v1258_v9  ;;  %v1262_v26 = vld [vmem:[#allocation5 + $0x88] sm:$0xff]  ;;  %v1261_v30 = vld [vmem:[#allocation5 + $0x80] sm:$0xff]  ;;  %v90_v33 = vld [vmem:[#allocation2 + $0x10] sm:$0xff] }
  0x1e   :  { %648 = vmatpush.bf16.msra.mxu2 %v1266_v10  ;;  %v1270_v27 = vld [vmem:[#allocation5 + $0xc8] sm:$0xff]  ;;  %v1269_v31 = vld [vmem:[#allocation5 + $0xc0] sm:$0xff]  ;;  %v1292_v35 = vld [vmem:[#allocation5 + $0x178] sm:$0xff]  ;;  %v98_v40 = vpack.c.bf16 %v90_v33, %v90_v33 }
  0x1f   :  { %661 = vmatpush.bf16.msra.mxu3 %v1274_v11  ;;  %v88_v34 = vld [vmem:[#allocation2] sm:$0xff]  ;;  %v91_v36 = vld [vmem:[#allocation2 + $0x18] sm:$0xff]  ;;  %v89_v37 = vld [vmem:[#allocation2 + $0x8] sm:$0xff] }
  0x20   :  { %623 = vmatpush.bf16.msra.mxu0 %v1249_v12  ;;  %v1300_v38 = vld [vmem:[#allocation5 + $0x1b8] sm:$0xff]  ;;  %v96_v41 = vpack.c.bf16 %v88_v34, %v88_v34  ;;  %v99_v42 = vpack.c.bf16 %v91_v36, %v91_v36  ;;  %v97_v43 = vpack.c.bf16 %v89_v37, %v89_v37  ;;  %v1283_v44 = vld [vmem:[#allocation5 + $0x130] sm:$0xff]  ;;  %v1282_v48 = vld [vmem:[#allocation5 + $0x128] sm:$0xff] }
  0x21   :  { %636 = vmatpush.bf16.msra.mxu1 %v1257_v13  ;;  %v1308_v39 = vld [vmem:[#allocation5 + $0x1f8] sm:$0xff]  ;;  %v1291_v45 = vld [vmem:[#allocation5 + $0x170] sm:$0xff]  ;;  %v1290_v49 = vld [vmem:[#allocation5 + $0x168] sm:$0xff] }
  0x22   :  { %649 = vmatpush.bf16.msra.mxu2 %v1265_v14  ;;  %v1299_v46 = vld [vmem:[#allocation5 + $0x1b0] sm:$0xff]  ;;  %v1298_v50 = vld [vmem:[#allocation5 + $0x1a8] sm:$0xff]  ;;  %v1281_v52 = vld [vmem:[#allocation5 + $0x120] sm:$0xff] }
  0x23   :  { %662 = vmatpush.bf16.msra.mxu3 %v1273_v15  ;;  %v1307_v47 = vld [vmem:[#allocation5 + $0x1f0] sm:$0xff]  ;;  %v1306_v51 = vld [vmem:[#allocation5 + $0x1e8] sm:$0xff]  ;;  %v1289_v53 = vld [vmem:[#allocation5 + $0x160] sm:$0xff] }
  0x24   :  { %624 = vmatpush.bf16.msra.mxu0 %v1248_v16  ;;  %v1297_v54 = vld [vmem:[#allocation5 + $0x1a0] sm:$0xff]  ;;  %v1280_v56 = vld [vmem:[#allocation5 + $0x118] sm:$0xff]  ;;  %v1279_v60 = vld [vmem:[#allocation5 + $0x110] sm:$0xff] }
  0x25   :  { %637 = vmatpush.bf16.msra.mxu1 %v1256_v17  ;;  %v1305_v55 = vld [vmem:[#allocation5 + $0x1e0] sm:$0xff]  ;;  %v1288_v57 = vld [vmem:[#allocation5 + $0x158] sm:$0xff]  ;;  %v1287_v61 = vld [vmem:[#allocation5 + $0x150] sm:$0xff] }
  0x26   :  { %650 = vmatpush.bf16.msra.mxu2 %v1264_v18  ;;  %v1296_v58 = vld [vmem:[#allocation5 + $0x198] sm:$0xff]  ;;  %v1295_v62 = vld [vmem:[#allocation5 + $0x190] sm:$0xff]  ;;  %v1278_v0 = vld [vmem:[#allocation5 + $0x108] sm:$0xff] }
  0x27   :  { %663 = vmatpush.bf16.msra.mxu3 %v1272_v19  ;;  %v1304_v59 = vld [vmem:[#allocation5 + $0x1d8] sm:$0xff]  ;;  %v1303_v63 = vld [vmem:[#allocation5 + $0x1d0] sm:$0xff]  ;;  %v1286_v1 = vld [vmem:[#allocation5 + $0x148] sm:$0xff] }
  0x28   :  { %625 = vmatpush.bf16.msra.mxu0 %v1247_v20  ;;  %v1294_v2 = vld [vmem:[#allocation5 + $0x188] sm:$0xff]  ;;  %v1277_v4 = vld [vmem:[#allocation5 + $0x100] sm:$0xff]  ;;  %v94_v10 = vld [vmem:[#allocation2 + $0x30] sm:$0xff] }
  0x29   :  { %638 = vmatpush.bf16.msra.mxu1 %v1255_v21  ;;  %v1302_v3 = vld [vmem:[#allocation5 + $0x1c8] sm:$0xff]  ;;  %v1285_v5 = vld [vmem:[#allocation5 + $0x140] sm:$0xff]  ;;  %v95_v11 = vld [vmem:[#allocation2 + $0x38] sm:$0xff]  ;;  %v102_v14 = vpack.c.bf16 %v94_v10, %v94_v10 }
  0x2a   :  { %651 = vmatpush.bf16.msra.mxu2 %v1263_v22  ;;  %v1293_v6 = vld [vmem:[#allocation5 + $0x180] sm:$0xff]  ;;  %v93_v8 = vld [vmem:[#allocation2 + $0x28] sm:$0xff]  ;;  %v103_v15 = vpack.c.bf16 %v95_v11, %v95_v11  ;;  %v1316_v16 = vld [vmem:[#allocation7 + $0x38] sm:$0xff] }
  0x2b   :  { %664 = vmatpush.bf16.msra.mxu3 %v1271_v23  ;;  %v92_v7 = vld [vmem:[#allocation2 + $0x20] sm:$0xff]  ;;  %v101_v13 = vpack.c.bf16 %v93_v8, %v93_v8  ;;  %v1315_v17 = vld [vmem:[#allocation7 + $0x30] sm:$0xff]  ;;  %v1314_v18 = vld [vmem:[#allocation7 + $0x28] sm:$0xff] }
  0x2c   :  { %626 = vmatpush.bf16.msra.mxu0 %v1246_v24  ;;  %v1301_v9 = vld [vmem:[#allocation5 + $0x1c0] sm:$0xff]  ;;  %v100_v12 = vpack.c.bf16 %v92_v7, %v92_v7  ;;  %v1312_v20 = vld [vmem:[#allocation7 + $0x18] sm:$0xff]  ;;  %v1311_v22 = vld [vmem:[#allocation7 + $0x10] sm:$0xff] }
  0x2d   :  { %639 = vmatpush.bf16.msra.mxu1 %v1254_v25  ;;  %v1313_v19 = vld [vmem:[#allocation7 + $0x20] sm:$0xff]  ;;  %v1310_v24 = vld [vmem:[#allocation7 + $0x8] sm:$0xff]  ;;  %v1323_v34 = vld [vmem:[#allocation8 + $0x30] sm:$0xff] }
  0x2e   :  { %652 = vmatpush.bf16.msra.mxu2 %v1262_v26  ;;  %v1322_v36 = vld [vmem:[#allocation8 + $0x28] sm:$0xff] }
  0x2f   :  { %665 = vmatpush.bf16.msra.mxu3 %v1270_v27 }
  0x30   :  { %627 = vmatpush.bf16.msra.mxu0 %v1245_v28  ;;  %v1309_v28 = vld [vmem:[#allocation7] sm:$0xff] }
  0x31   :  { %640 = vmatpush.bf16.msra.mxu1 %v1253_v29 }
  0x32   :  { %653 = vmatpush.bf16.msra.mxu2 %v1261_v30  ;;  %v1332_v30 = vld [vmem:[%s1538_s2] ss:$0 sm:$0xff] }
  0x33   :  { %666 = vmatpush.bf16.msra.mxu3 %v1269_v31  ;;  %628 = vmatmul.bf16.vlgmr.msra.gmra.mxu0 %v96_v41  ;;  %v1324_v31 = vld [vmem:[#allocation8 + $0x38] sm:$0xff] }
  0x34   :  { %672 = vmatpush.bf16.msrb.mxu0 %v1284_v32  ;;  %641 = vmatmul.bf16.vlgmr.msra.gmra.mxu1 %v97_v43 }
  0x35   :  { %685 = vmatpush.bf16.msrb.mxu1 %v1292_v35  ;;  %654 = vmatmul.bf16.vlgmr.msra.gmra.mxu2 %v98_v40  ;;  %v1320_v40 = vld [vmem:[#allocation8 + $0x18] sm:$0xff] }
  0x36   :  { %698 = vmatpush.bf16.msrb.mxu2 %v1300_v38  ;;  %667 = vmatmul.bf16.vlgmr.msra.gmra.mxu3 %v99_v42  ;;  %v1321_v38 = vld [vmem:[#allocation8 + $0x20] sm:$0xff] }
  0x37   :  { %711 = vmatpush.bf16.msrb.mxu3 %v1308_v39 }
  0x38   :  { %673 = vmatpush.bf16.msrb.mxu0 %v1283_v44 }
  0x39   :  { %686 = vmatpush.bf16.msrb.mxu1 %v1291_v45  ;;  %v1319_v45 = vld [vmem:[#allocation8 + $0x10] sm:$0xff] }
  0x3a   :  { %699 = vmatpush.bf16.msrb.mxu2 %v1299_v46 }
  0x3b   :  { %712 = vmatpush.bf16.msrb.mxu3 %v1307_v47 }
  0x3c   :  { %674 = vmatpush.bf16.msrb.mxu0 %v1282_v48 }
  0x3d   :  { %687 = vmatpush.bf16.msrb.mxu1 %v1290_v49 }
  0x3e   :  { %700 = vmatpush.bf16.msrb.mxu2 %v1298_v50 }
  0x3f   :  { %713 = vmatpush.bf16.msrb.mxu3 %v1306_v51 }
  0x40   :  { %675 = vmatpush.bf16.msrb.mxu0 %v1281_v52 }
  0x41   :  { %688 = vmatpush.bf16.msrb.mxu1 %v1289_v53 }
  0x42   :  { %701 = vmatpush.bf16.msrb.mxu2 %v1297_v54 }
  0x43   :  { %714 = vmatpush.bf16.msrb.mxu3 %v1305_v55 }
  0x44   :  { %676 = vmatpush.bf16.msrb.mxu0 %v1280_v56 }
  0x45   :  { %689 = vmatpush.bf16.msrb.mxu1 %v1288_v57  ;;  %v1318_v57 = vld [vmem:[#allocation8 + $0x8] sm:$0xff] }
  0x46   :  { %702 = vmatpush.bf16.msrb.mxu2 %v1296_v58  ;;  %v1317_v58 = vld [vmem:[#allocation8] sm:$0xff] }
  0x47   :  { %715 = vmatpush.bf16.msrb.mxu3 %v1304_v59  ;;  %v1333_v59 = vld [vmem:[%s1540_s4] ss:$0 sm:$0xff]  ;;  %s1471_s4 = smov [#allocation10]  }
  0x48   :  { %677 = vmatpush.bf16.msrb.mxu0 %v1279_v60  ;;  %s911_s24 = sshll.u32 %s1471_s4, 4  ;;  %s912_s24 = int_to_ptr.vmem [resolvable:$true] %s911_s24 }
  0x49   :  { %690 = vmatpush.bf16.msrb.mxu1 %v1287_v61 }
  0x4a   :  { %703 = vmatpush.bf16.msrb.mxu2 %v1295_v62 }
  0x4b   :  { %716 = vmatpush.bf16.msrb.mxu3 %v1303_v63 }
  0x4c   :  { %678 = vmatpush.bf16.msrb.mxu0 %v1278_v0 }
  0x4d   :  { %691 = vmatpush.bf16.msrb.mxu1 %v1286_v1  ;;  %v1334_v1 = vld [vmem:[%s1542_s6] ss:$0 sm:$0xff] }
  0x4e   :  { %704 = vmatpush.bf16.msrb.mxu2 %v1294_v2 }
  0x4f   :  { %717 = vmatpush.bf16.msrb.mxu3 %v1302_v3 }
  0x50   :  { %679 = vmatpush.bf16.msrb.mxu0 %v1277_v4 }
  0x51   :  { %692 = vmatpush.bf16.msrb.mxu1 %v1285_v5 }
  0x52   :  { %705 = vmatpush.bf16.msrb.mxu2 %v1293_v6 }
  0x53   :  { %718 = vmatpush.bf16.msrb.mxu3 %v1301_v9  ;;  %680 = vmatmul.bf16.vlgmr.msrb.gmra.mxu0 %v100_v12 }
  0x54   :  { %693 = vmatmul.bf16.vlgmr.msrb.gmra.mxu1 %v101_v13  ;;  %794 = vmatpush.bf16.msra.mxu0 %v1316_v16 }
  0x55   :  { %706 = vmatmul.bf16.vlgmr.msrb.gmra.mxu2 %v102_v14  ;;  %877 = vmatpush.bf16.msra.mxu1 %v1324_v31 }
  0x56   :  { %719 = vmatmul.bf16.vlgmr.msrb.gmra.mxu3 %v103_v15 }
  0x58   :  { %795 = vmatpush.bf16.msra.mxu0 %v1315_v17 }
  0x59   :  { %878 = vmatpush.bf16.msra.mxu1 %v1323_v34 }
  0x5c   :  { %796 = vmatpush.bf16.msra.mxu0 %v1314_v18 }
  0x5d   :  { %879 = vmatpush.bf16.msra.mxu1 %v1322_v36 }
  0x60   :  { %797 = vmatpush.bf16.msra.mxu0 %v1313_v19 }
  0x61   :  { %880 = vmatpush.bf16.msra.mxu1 %v1321_v38 }
  0x64   :  { %798 = vmatpush.bf16.msra.mxu0 %v1312_v20 }
  0x65   :  { %881 = vmatpush.bf16.msra.mxu1 %v1320_v40 }
  0x68   :  { %799 = vmatpush.bf16.msra.mxu0 %v1311_v22 }
  0x69   :  { %882 = vmatpush.bf16.msra.mxu1 %v1319_v45 }
  0x6c   :  { %800 = vmatpush.bf16.msra.mxu0 %v1310_v24 }
  0x6d   :  { %883 = vmatpush.bf16.msra.mxu1 %v1318_v57 }
  0x70   :  { %801 = vmatpush.bf16.msra.mxu0 %v1309_v28 }
  0x71   :  { %884 = vmatpush.bf16.msra.mxu1 %v1317_v58 }
  0xb0   :  { %v629_v21 = vpop.f32.mrf.mxu0 }
  0xb1   :  { %v642_v23 = vpop.f32.mrf.mxu1  ;;  %v630_v35 = vadd.f32 %v1332_v30, %v629_v21 }
  0xb3   :  { %v643_v37 = vadd.f32 %v642_v23, %v630_v35 }
  0xb8   :  { %v655_v25 = vpop.f32.mrf.mxu2  ;;  %v631_v27 = vpop.f32.mrf.mxu0 }
  0xb9   :  { %v668_v26 = vpop.f32.mrf.mxu3  ;;  %v644_v29 = vpop.f32.mrf.mxu1  ;;  %v656_v39 = vadd.f32 %v655_v25, %v643_v37 }
  0xbb   :  { %v669_v41 = vadd.f32 %v668_v26, %v656_v39 }
  0xc0   :  { %v657_v32 = vpop.f32.mrf.mxu2 }
  0xc1   :  { %v670_v33 = vpop.f32.mrf.mxu3 }
  0xd0   :  { %v681_v42 = vpop.f32.mrf.mxu0 }
  0xd1   :  { %v694_v43 = vpop.f32.mrf.mxu1  ;;  %v682_v44 = vadd.f32 %v681_v42, %v669_v41 }
  0xd3   :  { %v695_v46 = vadd.f32 %v694_v43, %v682_v44 }
  0xd8   :  { %v707_v47 = vpop.f32.mrf.mxu2  ;;  %v683_v50 = vpop.f32.mrf.mxu0 }
  0xd9   :  { %v720_v48 = vpop.f32.mrf.mxu3  ;;  %v708_v49 = vadd.f32 %v707_v47, %v695_v46  ;;  %v696_v51 = vpop.f32.mrf.mxu1 }
  0xdb   :  { %v721_v52 = vadd.f32 %v720_v48, %v708_v49 }
  0xdd   :  { %v724_v53 = vmax.f32 %v721_v52, 0.0 }
  0xdf   :  { %v725_v54 = vpack.c.bf16 %v724_v53, %v724_v53 }
  0xe0   :  { %v709_v55 = vpop.f32.mrf.mxu2 }
  0xe1   :  { %v722_v56 = vpop.f32.mrf.mxu3  ;;  %802 = vmatmul.bf16.vlgmr.msra.gmra.mxu0 %v725_v54 }
 0x15e   :  { %v803_v60 = vpop.f32.mrf.mxu0 }
 0x15f   :  { %v804_v61 = vadd.f32 %v1333_v59, %v803_v60 }
 0x161   :  { %v807_v62 = vmax.f32 %v804_v61, 0.0 }
 0x163   :  { %v808_v63 = vpack.c.bf16 %v807_v62, %v807_v62 }
 0x165   :  { %885 = vmatmul.bf16.vlgmr.msra.gmra.mxu1 %v808_v63 }
 0x166   :  { %v805_v0 = vpop.f32.mrf.mxu0 }
 0x1e2   :  { %v886_v2 = vpop.f32.mrf.mxu1 }
 0x1e3   :  { %v887_v3 = vadd.f32 %v1334_v1, %v886_v2 }
 0x1e5   :  { %v890_v4 = vmul.f32 %v887_v3, %v887_v3 }
 0x1e7   :  { %891 = vadd.xlane.f32.xlu0 %v890_v4 }
 0x1ea   :  { %v888_v5 = vpop.f32.mrf.mxu1 }
 0x25a   :  { %v892_v6 = vpop.xlane.xlu0 %891 }
 0x25b   :  { %v893_v7 = vmax.f32 %v892_v6, 1e-24 }
 0x25d   :  { %1335 = vrsqrt.f32 %v893_v7  ;;  %vm900_vm1 = vweird.f32 %v893_v7 }
 0x263   :  { %v1336_v8 = vpop.eup %1335 }
 0x264   :  { %v895_v9 = vmul.f32 %v1336_v8, %v893_v7  ;;  %vm901_vm0 = vweird.f32 %v1336_v8 }
 0x265   :  { %vm902_vm2 = vmor %vm900_vm1, %vm901_vm0 }
 0x266   :  { %v896_v10 = vmul.f32 %v1336_v8, %v895_v9 }
 0x268   :  { %v897_v11 = vmul.f32 0.5, %v896_v10 }
 0x26a   :  { %v898_v12 = vsub.f32 1.5, %v897_v11 }
 0x26c   :  { %v899_v13 = vmul.f32 %v1336_v8, %v898_v12 }
 0x26e   :  { %v903_v14 = vsel %vm902_vm2, %v1336_v8, %v899_v13 }
 0x26f   :  { %v904_v15 = vmul.f32 %v903_v14, %v887_v3 }
 0x271   :  { %905 = vst [vmem:[#allocation10] sm:$0xff] %v904_v15 }
 0x272   :  { %916 = dma.vmem_to_hbm [thread:$0]  %s912_s24, 128, %s914_s26, [#allocation4]  }
 0x273   :  { %1463 = dma.done.wait [#allocation4], 128  }
 0x274   :  { %1464 = vsyncadd [#allocation4], 4294967168 }
 0x275   :  { %921 = vsyncpa [#allocation3], 1 }
 0x276   :  { %922 = vsyncpa [#allocation6], 1 }
 0x277   :  { %923 = vsyncpa [#allocation9], 1 }
 0x278   :  { %924 = vsyncpa [#allocation4], 1 }

// kernel: tpu_custom_call.1
= control target key start
LH: loop header
LB: loop body
LE: loop exit
PB: predicated region body
PF: predicated region fallthrough
CT: control target
= control target key end

     0   :  { %12 = vsyncpa [#allocation3], 0  ;;  %s1536_s0 = inlined_call_operand.hbm [shape: f32[8,1024], index: 0, kind: input, shape index: {}]   ;;  %s1537_s1 = inlined_call_operand.hbm [shape: bf16[1024,128], index: 1, kind: input, shape index: {}]   ;;  %s1538_s2 = inlined_call_operand.vmem [shape: f32[1,128], index: 2, kind: input, shape index: {}]   ;;  %s1539_s3 = inlined_call_operand.hbm [shape: bf16[128,128], index: 3, kind: input, shape index: {}]   ;;  %s1540_s4 = inlined_call_operand.vmem [shape: f32[1,128], index: 4, kind: input, shape index: {}]   ;;  %s1541_s5 = inlined_call_operand.hbm [shape: bf16[128,128], index: 5, kind: input, shape index: {}]   ;;  %s1542_s6 = inlined_call_operand.vmem [shape: f32[1,128], index: 6, kind: input, shape index: {}]   ;;  %s1543_s7 = inlined_call_operand.hbm [shape: f32[8,128], index: 7, kind: output, shape index: {}]  }
   0x1   :  { %13 = vsyncpa [#allocation6], 0 }
   0x2   :  { %14 = vsyncpa [#allocation9], 0  ;;  %s31_s26 = sshll.u32 %s1537_s1, 4  ;;  %s32_s26 = int_to_ptr.hbm [resolvable:$true] %s31_s26 }
   0x3   :  { %15 = vsyncpa [#allocation4], 0  ;;  %s1465_s27 = smov [#allocation5]   ;;  %s21_s8 = sshll.u32 %s1536_s0, 4  ;;  %s22_s8 = int_to_ptr.hbm [resolvable:$true] %s21_s8 }
   0x4   :  { %s33_s28 = sshll.u32 %s1465_s27, 4  ;;  %s1466_s9 = smov 64   ;;  %s34_s28 = int_to_ptr.vmem [resolvable:$true] %s33_s28 }
   0x5   :  { %s1467_s10 = smov 4   ;;  %s1468_s11 = smov [#allocation2]  }
   0x6   :  { %39 = dma.hbm_to_vmem [thread:$0]  %s32_s26, 8192, %s34_s28, [#allocation6], %s1466_s9, %s1466_s9, %s1467_s10  }
   0x7   :  { %s23_s12 = sshll.u32 %s1468_s11, 4  ;;  %s46_s15 = sshll.u32 %s1539_s3, 4  ;;  %s24_s12 = int_to_ptr.vmem [resolvable:$true] %s23_s12  ;;  %s47_s15 = int_to_ptr.hbm [resolvable:$true] %s46_s15 }
   0x8   :  { %26 = dma.hbm_to_vmem [thread:$0]  %s22_s8, 1024, %s24_s12, [#allocation3]  }
   0x9   :  { %s61_s17 = sshll.u32 %s1541_s5, 4  ;;  %s1469_s18 = smov [#allocation7]   ;;  %s62_s17 = int_to_ptr.hbm [resolvable:$true] %s61_s17 }
   0xa   :  { %s48_s19 = sshll.u32 %s1469_s18, 4  ;;  %s1470_s0 = smov [#allocation8]   ;;  %s49_s19 = int_to_ptr.vmem [resolvable:$true] %s48_s19 }
   0xb   :  { %54 = dma.hbm_to_vmem [thread:$0]  %s47_s15, 1024, %s49_s19, [#allocation6], %s1466_s9, %s1466_s9, %s1467_s10  }
   0xc   :  { %s63_s20 = sshll.u32 %s1470_s0, 4  ;;  %s64_s20 = int_to_ptr.vmem [resolvable:$true] %s63_s20 }
   0xd   :  { %69 = dma.hbm_to_vmem [thread:$0]  %s62_s17, 1024, %s64_s20, [#allocation9], %s1466_s9, %s1466_s9, %s1467_s10  }
   0xe   :  { %1457 = dma.done.wait [#allocation3], 1024  }
   0xf   :  { %1458 = vsyncadd [#allocation3], 4294966272 }
  0x10   :  { %1459 = dma.done.wait [#allocation6], 9216  }
  0x11   :  { %1460 = vsyncadd [#allocation6], 4294958080 }
  0x12   :  { %1461 = dma.done.wait [#allocation9], 1024  }
  0x13   :  { %1462 = vsyncadd [#allocation9], 4294966272  ;;  %v1252_v0 = vld [vmem:[#allocation5 + $0x38] sm:$0xff]  ;;  %v1251_v4 = vld [vmem:[#allocation5 + $0x30] sm:$0xff]  ;;  %s913_s26 = sshll.u32 %s1543_s7, 4  ;;  %s914_s26 = int_to_ptr.hbm [resolvable:$true] %s913_s26 }
  0x14   :  { %v1260_v1 = vld [vmem:[#allocation5 + $0x78] sm:$0xff]  ;;  %620 = vmatpush.bf16.msra.mxu0 %v1252_v0  ;;  %v1259_v5 = vld [vmem:[#allocation5 + $0x70] sm:$0xff]  ;;  %v1250_v8 = vld [vmem:[#allocation5 + $0x28] sm:$0xff] }
  0x15   :  { %v1268_v2 = vld [vmem:[#allocation5 + $0xb8] sm:$0xff]  ;;  %633 = vmatpush.bf16.msra.mxu1 %v1260_v1  ;;  %v1267_v6 = vld [vmem:[#allocation5 + $0xb0] sm:$0xff]  ;;  %v1258_v9 = vld [vmem:[#allocation5 + $0x68] sm:$0xff] }
  0x16   :  { %v1276_v3 = vld [vmem:[#allocation5 + $0xf8] sm:$0xff]  ;;  %646 = vmatpush.bf16.msra.mxu2 %v1268_v2  ;;  %v1275_v7 = vld [vmem:[#allocation5 + $0xf0] sm:$0xff]  ;;  %v1266_v10 = vld [vmem:[#allocation5 + $0xa8] sm:$0xff] }
  0x17   :  { %659 = vmatpush.bf16.msra.mxu3 %v1276_v3  ;;  %v1274_v11 = vld [vmem:[#allocation5 + $0xe8] sm:$0xff]  ;;  %v1249_v12 = vld [vmem:[#allocation5 + $0x20] sm:$0xff]  ;;  %v1248_v16 = vld [vmem:[#allocation5 + $0x18] sm:$0xff] }
  0x18   :  { %621 = vmatpush.bf16.msra.mxu0 %v1251_v4  ;;  %v1257_v13 = vld [vmem:[#allocation5 + $0x60] sm:$0xff]  ;;  %v1256_v17 = vld [vmem:[#allocation5 + $0x58] sm:$0xff]  ;;  %v1247_v20 = vld [vmem:[#allocation5 + $0x10] sm:$0xff] }
  0x19   :  { %634 = vmatpush.bf16.msra.mxu1 %v1259_v5  ;;  %v1265_v14 = vld [vmem:[#allocation5 + $0xa0] sm:$0xff]  ;;  %v1264_v18 = vld [vmem:[#allocation5 + $0x98] sm:$0xff]  ;;  %v1255_v21 = vld [vmem:[#allocation5 + $0x50] sm:$0xff] }
  0x1a   :  { %647 = vmatpush.bf16.msra.mxu2 %v1267_v6  ;;  %v1273_v15 = vld [vmem:[#allocation5 + $0xe0] sm:$0xff]  ;;  %v1272_v19 = vld [vmem:[#allocation5 + $0xd8] sm:$0xff]  ;;  %v1263_v22 = vld [vmem:[#allocation5 + $0x90] sm:$0xff] }
  0x1b   :  { %660 = vmatpush.bf16.msra.mxu3 %v1275_v7  ;;  %v1271_v23 = vld [vmem:[#allocation5 + $0xd0] sm:$0xff]  ;;  %v1246_v24 = vld [vmem:[#allocation5 + $0x8] sm:$0xff]  ;;  %v1245_v28 = vld [vmem:[#allocation5] sm:$0xff] }
  0x1c   :  { %622 = vmatpush.bf16.msra.mxu0 %v1250_v8  ;;  %v1254_v25 = vld [vmem:[#allocation5 + $0x48] sm:$0xff]  ;;  %v1253_v29 = vld [vmem:[#allocation5 + $0x40] sm:$0xff]  ;;  %v1284_v32 = vld [vmem:[#allocation5 + $0x138] sm:$0xff] }
  0x1d   :  { %635 = vmatpush.bf16.msra.mxu1 %v1258_v9  ;;  %v1262_v26 = vld [vmem:[#allocation5 + $0x88] sm:$0xff]  ;;  %v1261_v30 = vld [vmem:[#allocation5 + $0x80] sm:$0xff]  ;;  %v90_v33 = vld [vmem:[#allocation2 + $0x10] sm:$0xff] }
  0x1e   :  { %648 = vmatpush.bf16.msra.mxu2 %v1266_v10  ;;  %v1270_v27 = vld [vmem:[#allocation5 + $0xc8] sm:$0xff]  ;;  %v1269_v31 = vld [vmem:[#allocation5 + $0xc0] sm:$0xff]  ;;  %v1292_v35 = vld [vmem:[#allocation5 + $0x178] sm:$0xff]  ;;  %v98_v40 = vpack.c.bf16 %v90_v33, %v90_v33 }
  0x1f   :  { %661 = vmatpush.bf16.msra.mxu3 %v1274_v11  ;;  %v88_v34 = vld [vmem:[#allocation2] sm:$0xff]  ;;  %v91_v36 = vld [vmem:[#allocation2 + $0x18] sm:$0xff]  ;;  %v89_v37 = vld [vmem:[#allocation2 + $0x8] sm:$0xff] }
  0x20   :  { %623 = vmatpush.bf16.msra.mxu0 %v1249_v12  ;;  %v1300_v38 = vld [vmem:[#allocation5 + $0x1b8] sm:$0xff]  ;;  %v96_v41 = vpack.c.bf16 %v88_v34, %v88_v34  ;;  %v99_v42 = vpack.c.bf16 %v91_v36, %v91_v36  ;;  %v97_v43 = vpack.c.bf16 %v89_v37, %v89_v37  ;;  %v1283_v44 = vld [vmem:[#allocation5 + $0x130] sm:$0xff]  ;;  %v1282_v48 = vld [vmem:[#allocation5 + $0x128] sm:$0xff] }
  0x21   :  { %636 = vmatpush.bf16.msra.mxu1 %v1257_v13  ;;  %v1308_v39 = vld [vmem:[#allocation5 + $0x1f8] sm:$0xff]  ;;  %v1291_v45 = vld [vmem:[#allocation5 + $0x170] sm:$0xff]  ;;  %v1290_v49 = vld [vmem:[#allocation5 + $0x168] sm:$0xff] }
  0x22   :  { %649 = vmatpush.bf16.msra.mxu2 %v1265_v14  ;;  %v1299_v46 = vld [vmem:[#allocation5 + $0x1b0] sm:$0xff]  ;;  %v1298_v50 = vld [vmem:[#allocation5 + $0x1a8] sm:$0xff]  ;;  %v1281_v52 = vld [vmem:[#allocation5 + $0x120] sm:$0xff] }
  0x23   :  { %662 = vmatpush.bf16.msra.mxu3 %v1273_v15  ;;  %v1307_v47 = vld [vmem:[#allocation5 + $0x1f0] sm:$0xff]  ;;  %v1306_v51 = vld [vmem:[#allocation5 + $0x1e8] sm:$0xff]  ;;  %v1289_v53 = vld [vmem:[#allocation5 + $0x160] sm:$0xff] }
  0x24   :  { %624 = vmatpush.bf16.msra.mxu0 %v1248_v16  ;;  %v1297_v54 = vld [vmem:[#allocation5 + $0x1a0] sm:$0xff]  ;;  %v1280_v56 = vld [vmem:[#allocation5 + $0x118] sm:$0xff]  ;;  %v1279_v60 = vld [vmem:[#allocation5 + $0x110] sm:$0xff] }
  0x25   :  { %637 = vmatpush.bf16.msra.mxu1 %v1256_v17  ;;  %v1305_v55 = vld [vmem:[#allocation5 + $0x1e0] sm:$0xff]  ;;  %v1288_v57 = vld [vmem:[#allocation5 + $0x158] sm:$0xff]  ;;  %v1287_v61 = vld [vmem:[#allocation5 + $0x150] sm:$0xff] }
  0x26   :  { %650 = vmatpush.bf16.msra.mxu2 %v1264_v18  ;;  %v1296_v58 = vld [vmem:[#allocation5 + $0x198] sm:$0xff]  ;;  %v1295_v62 = vld [vmem:[#allocation5 + $0x190] sm:$0xff]  ;;  %v1278_v0 = vld [vmem:[#allocation5 + $0x108] sm:$0xff] }
  0x27   :  { %663 = vmatpush.bf16.msra.mxu3 %v1272_v19  ;;  %v1304_v59 = vld [vmem:[#allocation5 + $0x1d8] sm:$0xff]  ;;  %v1303_v63 = vld [vmem:[#allocation5 + $0x1d0] sm:$0xff]  ;;  %v1286_v1 = vld [vmem:[#allocation5 + $0x148] sm:$0xff] }
  0x28   :  { %625 = vmatpush.bf16.msra.mxu0 %v1247_v20  ;;  %v1294_v2 = vld [vmem:[#allocation5 + $0x188] sm:$0xff]  ;;  %v1277_v4 = vld [vmem:[#allocation5 + $0x100] sm:$0xff]  ;;  %v94_v10 = vld [vmem:[#allocation2 + $0x30] sm:$0xff] }
  0x29   :  { %638 = vmatpush.bf16.msra.mxu1 %v1255_v21  ;;  %v1302_v3 = vld [vmem:[#allocation5 + $0x1c8] sm:$0xff]  ;;  %v1285_v5 = vld [vmem:[#allocation5 + $0x140] sm:$0xff]  ;;  %v95_v11 = vld [vmem:[#allocation2 + $0x38] sm:$0xff]  ;;  %v102_v14 = vpack.c.bf16 %v94_v10, %v94_v10 }
  0x2a   :  { %651 = vmatpush.bf16.msra.mxu2 %v1263_v22  ;;  %v1293_v6 = vld [vmem:[#allocation5 + $0x180] sm:$0xff]  ;;  %v93_v8 = vld [vmem:[#allocation2 + $0x28] sm:$0xff]  ;;  %v103_v15 = vpack.c.bf16 %v95_v11, %v95_v11  ;;  %v1316_v16 = vld [vmem:[#allocation7 + $0x38] sm:$0xff] }
  0x2b   :  { %664 = vmatpush.bf16.msra.mxu3 %v1271_v23  ;;  %v92_v7 = vld [vmem:[#allocation2 + $0x20] sm:$0xff]  ;;  %v101_v13 = vpack.c.bf16 %v93_v8, %v93_v8  ;;  %v1315_v17 = vld [vmem:[#allocation7 + $0x30] sm:$0xff]  ;;  %v1314_v18 = vld [vmem:[#allocation7 + $0x28] sm:$0xff] }
  0x2c   :  { %626 = vmatpush.bf16.msra.mxu0 %v1246_v24  ;;  %v1301_v9 = vld [vmem:[#allocation5 + $0x1c0] sm:$0xff]  ;;  %v100_v12 = vpack.c.bf16 %v92_v7, %v92_v7  ;;  %v1312_v20 = vld [vmem:[#allocation7 + $0x18] sm:$0xff]  ;;  %v1311_v22 = vld [vmem:[#allocation7 + $0x10] sm:$0xff] }
  0x2d   :  { %639 = vmatpush.bf16.msra.mxu1 %v1254_v25  ;;  %v1313_v19 = vld [vmem:[#allocation7 + $0x20] sm:$0xff]  ;;  %v1310_v24 = vld [vmem:[#allocation7 + $0x8] sm:$0xff]  ;;  %v1323_v34 = vld [vmem:[#allocation8 + $0x30] sm:$0xff] }
  0x2e   :  { %652 = vmatpush.bf16.msra.mxu2 %v1262_v26  ;;  %v1322_v36 = vld [vmem:[#allocation8 + $0x28] sm:$0xff] }
  0x2f   :  { %665 = vmatpush.bf16.msra.mxu3 %v1270_v27 }
  0x30   :  { %627 = vmatpush.bf16.msra.mxu0 %v1245_v28  ;;  %v1309_v28 = vld [vmem:[#allocation7] sm:$0xff] }
  0x31   :  { %640 = vmatpush.bf16.msra.mxu1 %v1253_v29 }
  0x32   :  { %653 = vmatpush.bf16.msra.mxu2 %v1261_v30  ;;  %v1332_v30 = vld [vmem:[%s1538_s2] ss:$0 sm:$0xff] }
  0x33   :  { %666 = vmatpush.bf16.msra.mxu3 %v1269_v31  ;;  %628 = vmatmul.bf16.vlgmr.msra.gmra.mxu0 %v96_v41  ;;  %v1324_v31 = vld [vmem:[#allocation8 + $0x38] sm:$0xff] }
  0x34   :  { %672 = vmatpush.bf16.msrb.mxu0 %v1284_v32  ;;  %641 = vmatmul.bf16.vlgmr.msra.gmra.mxu1 %v97_v43 }
  0x35   :  { %685 = vmatpush.bf16.msrb.mxu1 %v1292_v35  ;;  %654 = vmatmul.bf16.vlgmr.msra.gmra.mxu2 %v98_v40  ;;  %v1320_v40 = vld [vmem:[#allocation8 + $0x18] sm:$0xff] }
  0x36   :  { %698 = vmatpush.bf16.msrb.mxu2 %v1300_v38  ;;  %667 = vmatmul.bf16.vlgmr.msra.gmra.mxu3 %v99_v42  ;;  %v1321_v38 = vld [vmem:[#allocation8 + $0x20] sm:$0xff] }
  0x37   :  { %711 = vmatpush.bf16.msrb.mxu3 %v1308_v39 }
  0x38   :  { %673 = vmatpush.bf16.msrb.mxu0 %v1283_v44 }
  0x39   :  { %686 = vmatpush.bf16.msrb.mxu1 %v1291_v45  ;;  %v1319_v45 = vld [vmem:[#allocation8 + $0x10] sm:$0xff] }
  0x3a   :  { %699 = vmatpush.bf16.msrb.mxu2 %v1299_v46 }
  0x3b   :  { %712 = vmatpush.bf16.msrb.mxu3 %v1307_v47 }
  0x3c   :  { %674 = vmatpush.bf16.msrb.mxu0 %v1282_v48 }
  0x3d   :  { %687 = vmatpush.bf16.msrb.mxu1 %v1290_v49 }
  0x3e   :  { %700 = vmatpush.bf16.msrb.mxu2 %v1298_v50 }
  0x3f   :  { %713 = vmatpush.bf16.msrb.mxu3 %v1306_v51 }
  0x40   :  { %675 = vmatpush.bf16.msrb.mxu0 %v1281_v52 }
  0x41   :  { %688 = vmatpush.bf16.msrb.mxu1 %v1289_v53 }
  0x42   :  { %701 = vmatpush.bf16.msrb.mxu2 %v1297_v54 }
  0x43   :  { %714 = vmatpush.bf16.msrb.mxu3 %v1305_v55 }
  0x44   :  { %676 = vmatpush.bf16.msrb.mxu0 %v1280_v56 }
  0x45   :  { %689 = vmatpush.bf16.msrb.mxu1 %v1288_v57  ;;  %v1318_v57 = vld [vmem:[#allocation8 + $0x8] sm:$0xff] }
  0x46   :  { %702 = vmatpush.bf16.msrb.mxu2 %v1296_v58  ;;  %v1317_v58 = vld [vmem:[#allocation8] sm:$0xff] }
  0x47   :  { %715 = vmatpush.bf16.msrb.mxu3 %v1304_v59  ;;  %v1333_v59 = vld [vmem:[%s1540_s4] ss:$0 sm:$0xff]  ;;  %s1471_s4 = smov [#allocation10]  }
  0x48   :  { %677 = vmatpush.bf16.msrb.mxu0 %v1279_v60  ;;  %s911_s24 = sshll.u32 %s1471_s4, 4  ;;  %s912_s24 = int_to_ptr.vmem [resolvable:$true] %s911_s24 }
  0x49   :  { %690 = vmatpush.bf16.msrb.mxu1 %v1287_v61 }
  0x4a   :  { %703 = vmatpush.bf16.msrb.mxu2 %v1295_v62 }
  0x4b   :  { %716 = vmatpush.bf16.msrb.mxu3 %v1303_v63 }
  0x4c   :  { %678 = vmatpush.bf16.msrb.mxu0 %v1278_v0 }
  0x4d   :  { %691 = vmatpush.bf16.msrb.mxu1 %v1286_v1  ;;  %v1334_v1 = vld [vmem:[%s1542_s6] ss:$0 sm:$0xff] }
  0x4e   :  { %704 = vmatpush.bf16.msrb.mxu2 %v1294_v2 }
  0x4f   :  { %717 = vmatpush.bf16.msrb.mxu3 %v1302_v3 }
  0x50   :  { %679 = vmatpush.bf16.msrb.mxu0 %v1277_v4 }
  0x51   :  { %692 = vmatpush.bf16.msrb.mxu1 %v1285_v5 }
  0x52   :  { %705 = vmatpush.bf16.msrb.mxu2 %v1293_v6 }
  0x53   :  { %718 = vmatpush.bf16.msrb.mxu3 %v1301_v9  ;;  %680 = vmatmul.bf16.vlgmr.msrb.gmra.mxu0 %v100_v12 }
  0x54   :  { %693 = vmatmul.bf16.vlgmr.msrb.gmra.mxu1 %v101_v13  ;;  %794 = vmatpush.bf16.msra.mxu0 %v1316_v16 }
  0x55   :  { %706 = vmatmul.bf16.vlgmr.msrb.gmra.mxu2 %v102_v14  ;;  %877 = vmatpush.bf16.msra.mxu1 %v1324_v31 }
  0x56   :  { %719 = vmatmul.bf16.vlgmr.msrb.gmra.mxu3 %v103_v15 }
  0x58   :  { %795 = vmatpush.bf16.msra.mxu0 %v1315_v17 }
  0x59   :  { %878 = vmatpush.bf16.msra.mxu1 %v1323_v34 }
  0x5c   :  { %796 = vmatpush.bf16.msra.mxu0 %v1314_v18 }
  0x5d   :  { %879 = vmatpush.bf16.msra.mxu1 %v1322_v36 }
  0x60   :  { %797 = vmatpush.bf16.msra.mxu0 %v1313_v19 }
  0x61   :  { %880 = vmatpush.bf16.msra.mxu1 %v1321_v38 }
  0x64   :  { %798 = vmatpush.bf16.msra.mxu0 %v1312_v20 }
  0x65   :  { %881 = vmatpush.bf16.msra.mxu1 %v1320_v40 }
  0x68   :  { %799 = vmatpush.bf16.msra.mxu0 %v1311_v22 }
  0x69   :  { %882 = vmatpush.bf16.msra.mxu1 %v1319_v45 }
  0x6c   :  { %800 = vmatpush.bf16.msra.mxu0 %v1310_v24 }
  0x6d   :  { %883 = vmatpush.bf16.msra.mxu1 %v1318_v57 }
  0x70   :  { %801 = vmatpush.bf16.msra.mxu0 %v1309_v28 }
  0x71   :  { %884 = vmatpush.bf16.msra.mxu1 %v1317_v58 }
  0xb0   :  { %v629_v21 = vpop.f32.mrf.mxu0 }
  0xb1   :  { %v642_v23 = vpop.f32.mrf.mxu1  ;;  %v630_v35 = vadd.f32 %v1332_v30, %v629_v21 }
  0xb3   :  { %v643_v37 = vadd.f32 %v642_v23, %v630_v35 }
  0xb8   :  { %v655_v25 = vpop.f32.mrf.mxu2  ;;  %v631_v27 = vpop.f32.mrf.mxu0 }
  0xb9   :  { %v668_v26 = vpop.f32.mrf.mxu3  ;;  %v644_v29 = vpop.f32.mrf.mxu1  ;;  %v656_v39 = vadd.f32 %v655_v25, %v643_v37 }
  0xbb   :  { %v669_v41 = vadd.f32 %v668_v26, %v656_v39 }
  0xc0   :  { %v657_v32 = vpop.f32.mrf.mxu2 }
  0xc1   :  { %v670_v33 = vpop.f32.mrf.mxu3 }
  0xd0   :  { %v681_v42 = vpop.f32.mrf.mxu0 }
  0xd1   :  { %v694_v43 = vpop.f32.mrf.mxu1  ;;  %v682_v44 = vadd.f32 %v681_v42, %v669_v41 }
  0xd3   :  { %v695_v46 = vadd.f32 %v694_v43, %v682_v44 }
  0xd8   :  { %v707_v47 = vpop.f32.mrf.mxu2  ;;  %v683_v50 = vpop.f32.mrf.mxu0 }
  0xd9   :  { %v720_v48 = vpop.f32.mrf.mxu3  ;;  %v708_v49 = vadd.f32 %v707_v47, %v695_v46  ;;  %v696_v51 = vpop.f32.mrf.mxu1 }
  0xdb   :  { %v721_v52 = vadd.f32 %v720_v48, %v708_v49 }
  0xdd   :  { %v724_v53 = vmax.f32 %v721_v52, 0.0 }
  0xdf   :  { %v725_v54 = vpack.c.bf16 %v724_v53, %v724_v53 }
  0xe0   :  { %v709_v55 = vpop.f32.mrf.mxu2 }
  0xe1   :  { %v722_v56 = vpop.f32.mrf.mxu3  ;;  %802 = vmatmul.bf16.vlgmr.msra.gmra.mxu0 %v725_v54 }
 0x15e   :  { %v803_v60 = vpop.f32.mrf.mxu0 }
 0x15f   :  { %v804_v61 = vadd.f32 %v1333_v59, %v803_v60 }
 0x161   :  { %v807_v62 = vmax.f32 %v804_v61, 0.0 }
 0x163   :  { %v808_v63 = vpack.c.bf16 %v807_v62, %v807_v62 }
 0x165   :  { %885 = vmatmul.bf16.vlgmr.msra.gmra.mxu1 %v808_v63 }
 0x166   :  { %v805_v0 = vpop.f32.mrf.mxu0 }
 0x1e2   :  { %v886_v2 = vpop.f32.mrf.mxu1 }
 0x1e3   :  { %v887_v3 = vadd.f32 %v1334_v1, %v886_v2 }
 0x1e5   :  { %v890_v4 = vmul.f32 %v887_v3, %v887_v3 }
 0x1e7   :  { %891 = vadd.xlane.f32.xlu0 %v890_v4 }
 0x1ea   :  { %v888_v5 = vpop.f32.mrf.mxu1 }
 0x25a   :  { %v892_v6 = vpop.xlane.xlu0 %891 }
 0x25b   :  { %v893_v7 = vmax.f32 %v892_v6, 1e-24 }
 0x25d   :  { %1335 = vrsqrt.f32 %v893_v7  ;;  %vm900_vm1 = vweird.f32 %v893_v7 }
 0x263   :  { %v1336_v8 = vpop.eup %1335 }
 0x264   :  { %v895_v9 = vmul.f32 %v1336_v8, %v893_v7  ;;  %vm901_vm0 = vweird.f32 %v1336_v8 }
 0x265   :  { %vm902_vm2 = vmor %vm900_vm1, %vm901_vm0 }
 0x266   :  { %v896_v10 = vmul.f32 %v1336_v8, %v895_v9 }
 0x268   :  { %v897_v11 = vmul.f32 0.5, %v896_v10 }
 0x26a   :  { %v898_v12 = vsub.f32 1.5, %v897_v11 }
 0x26c   :  { %v899_v13 = vmul.f32 %v1336_v8, %v898_v12 }
 0x26e   :  { %v903_v14 = vsel %vm902_vm2, %v1336_v8, %v899_v13 }
 0x26f   :  { %v904_v15 = vmul.f32 %v903_v14, %v887_v3 }
 0x271   :  { %905 = vst [vmem:[#allocation10] sm:$0xff] %v904_v15 }
 0x272   :  { %916 = dma.vmem_to_hbm [thread:$0]  %s912_s24, 128, %s914_s26, [#allocation4]  }
 0x273   :  { %1463 = dma.done.wait [#allocation4], 128  }
 0x274   :  { %1464 = vsyncadd [#allocation4], 4294967168 }
 0x275   :  { %921 = vsyncpa [#allocation3], 1 }
 0x276   :  { %922 = vsyncpa [#allocation6], 1 }
 0x277   :  { %923 = vsyncpa [#allocation9], 1 }
 0x278   :  { %924 = vsyncpa [#allocation4], 1 }

</bundles_post_ra>
